<compile_context>
chip_gen: v6e
topology: v6e:2x2x1
jax: 0.10.0
libtpu: 0.0.40
codegen_flags: <defaults>
</compile_context>

<pallas_src>
import jax
import jax.numpy as jnp
from jax import lax
from jax.experimental import pallas as pl
from jax.experimental.pallas import tpu as pltpu

# ---- static module config (mirrors TR(degree, knots).__init__) ----
DEGREE = 2
KNOTS = (0.33, 0.66)
NUM_BASIS = DEGREE + 1 + len(KNOTS)     # = d = 5
assert DEGREE == 2  # DEGREE==1 uses different knot indexing in the reference

LANE = 128
STRIP_ROWS = 256                        # rows per in-kernel strip (bounds vregs)
DEFAULT_BLOCK_ROWS = 2048               # 2048*128*4 B = 1 MiB per f32 block
MIN_GRID_BLOCKS = 4                     # keep >= 2 blocks per TensorCore on v7x
MIN_PALLAS_BATCH = 32768                # below this, fused XLA elementwise wins


def _round_up(a, m):
    return ((a + m - 1) // m) * m


def _spline_eval(x, w_poly, w_knot):
    """phi(x) @ w as a fused elementwise expression (Horner + relu^2 terms)."""
    acc = x * w_poly[DEGREE] + w_poly[DEGREE - 1]
    for j in range(DEGREE - 2, -1, -1):
        acc = acc * x + w_poly[j]
    for i, kn in enumerate(KNOTS):
        u = jnp.maximum(x - kn, 0.0)
        acc = acc + w_knot[i] * (u * u)          # DEGREE == 2 -> u * u
    return acc


def tr_kernel(x_ref, w_ref, o_ref):
    """x_ref/o_ref: (br, 128) VMEM blocks; w_ref: (NUM_BASIS,) f32 in SMEM."""
    w_poly = [w_ref[j] for j in range(DEGREE + 1)]
    w_knot = [w_ref[DEGREE + 1 + i] for i in range(len(KNOTS))]

    br = x_ref.shape[0]
    strip = br if br <= STRIP_ROWS else STRIP_ROWS   # wrapper guarantees br % strip == 0
    n_strips = br // strip

    if n_strips == 1:
        o_ref[...] = _spline_eval(x_ref[...], w_poly, w_knot)
    else:
        def body(s, carry):
            r = pl.multiple_of(s * strip, strip)
            x = x_ref[pl.ds(r, strip), :]
            o_ref[pl.ds(r, strip), :] = _spline_eval(x, w_poly, w_knot)
            return carry
        lax.fori_loop(0, n_strips, body, 0)


def tr_fused(x, w):
    """Fused elementwise fallback for small batches (same math as the kernel)."""
    w_poly = [w[j] for j in range(DEGREE + 1)]
    w_knot = [w[DEGREE + 1 + i] for i in range(len(KNOTS))]
    return _spline_eval(x.astype(jnp.float32), w_poly, w_knot)


def tr_reference(t, weight):
    """Literal translation of Truncated_power.forward + matmul (testing only)."""
    x = t.reshape(-1).astype(jnp.float32)
    cols = []
    for j in range(NUM_BASIS):
        if j == 0:
            cols.append(jnp.ones_like(x))
        elif j <= DEGREE:
            cols.append(x ** j)
        else:
            cols.append(jnp.maximum(x - KNOTS[j - DEGREE - 1], 0.0) ** DEGREE)
    basis = jnp.stack(cols, axis=1)            # (B, NUM_BASIS)
    return basis @ weight.astype(jnp.float32)  # (B,)


def tr_forward(t, weight, *, block_rows=DEFAULT_BLOCK_ROWS,
               min_pallas_batch=MIN_PALLAS_BATCH):
    """t: (B,) or (B, 1) float32; weight: (NUM_BASIS,) float32 -> (B,) float32."""
    x = t.reshape(-1).astype(jnp.float32)
    w = weight.astype(jnp.float32)
    B = x.shape[0]

    # Small/medium batches: the whole op is a few us; a fused XLA elementwise
    # expression matches the kernel math and skips all pad/reshape/slice plumbing.
    if B < min_pallas_batch:
        return tr_fused(x, w)

    # ---- block-size selection ----
    rows = _round_up(pl.cdiv(B, LANE), 8)                 # sublane-aligned row count
    block_rows = max(8, (block_rows // 8) * 8)
    br = min(block_rows, rows,
             _round_up(pl.cdiv(rows, MIN_GRID_BLOCKS), 8))  # keep >= 4 grid steps
    if br > STRIP_ROWS:                                     # strip loop divides evenly
        br = (br // STRIP_ROWS) * STRIP_ROWS
    rows_padded = _round_up(rows, br)
    n_blocks = rows_padded // br

    # in + out, double-buffered; raise the scoped-VMEM limit only if needed
    # (v5e default scoped VMEM is 16 MiB).
    vmem_needed = 2 * 2 * br * LANE * 4
    vmem_limit = None
    if vmem_needed > 12 * 1024 * 1024:
        vmem_limit = min(2 * vmem_needed, 64 * 1024 * 1024)

    # Lane-dense (rows_padded, 128) slab. Padded tail evaluates to phi(0)@w = w[0]
    # and is sliced off below. Under jit, allow_input_fusion folds this pad/reshape
    # into the kernel's operand read instead of materializing an extra HBM copy.
    x2d = jnp.pad(x, (0, rows_padded * LANE - B)).reshape(rows_padded, LANE)

    out = pl.pallas_call(
        tr_kernel,
        out_shape=jax.ShapeDtypeStruct((rows_padded, LANE), jnp.float32),
        grid=(n_blocks,),
        in_specs=[
            pl.BlockSpec((br, LANE), lambda i: (i, 0)),
            pl.BlockSpec(memory_space=pltpu.MemorySpace.SMEM),   # 5 spline weights
        ],
        out_specs=pl.BlockSpec((br, LANE), lambda i: (i, 0)),
        compiler_params=pltpu.CompilerParams(
            dimension_semantics=("parallel",),        # shard blocks across v7x TCs
            allow_input_fusion=[True, False],         # fold pad/reshape into x2d read
            vmem_limit_bytes=vmem_limit,
        ),
    )(x2d, w)

    # reshape is free; the [:B] slice fuses into downstream consumers under jit.
    return out.reshape(-1)[:B]

# TODO(synk): optional bf16 HBM I/O (halves bytes moved; in-kernel math stays f32)
# left out to keep exact f32 parity with the PyTorch module.


if __name__ == "__main__":
    key = jax.random.PRNGKey(0)
    k_w, k_t1, k_t2, k_t3 = jax.random.split(key, 4)

    # deterministic stand-in for torch.rand(d)
    weight = jax.random.uniform(k_w, (NUM_BASIS,), dtype=jnp.float32)
    tr_fwd = jax.jit(tr_forward)

    # --- medium batch: Pallas path, 4 grid blocks, padded tail, single-strip kernel ---
    batch = 70_000
    t = jax.random.uniform(k_t1, (batch, 1), dtype=jnp.float32)
    out = jax.block_until_ready(tr_fwd(t, weight))
    ref = tr_reference(t, weight)
    assert out.shape == (batch,)
    assert jnp.allclose(out, ref, atol=1e-5, rtol=1e-5)

    # --- large batch: exercises 1 MiB (2048, 128) blocks + in-kernel strip loop ---
    batch_big = 1_200_000
    t_big = jax.random.uniform(k_t2, (batch_big, 1), dtype=jnp.float32)
    out_big = jax.block_until_ready(tr_fwd(t_big, weight))
    ref_big = tr_fused(t_big.reshape(-1), weight)
    assert out_big.shape == (batch_big,)
    assert jnp.allclose(out_big, ref_big, atol=1e-5, rtol=1e-5)

    # --- small batch: fused XLA fallback (Pallas launch overhead not worth it) ---
    batch_small = 16
    t_small = jax.random.uniform(k_t3, (batch_small, 1), dtype=jnp.float32)
    out_small = jax.block_until_ready(tr_fwd(t_small, weight))
    ref_small = tr_reference(t_small, weight)
    assert out_small.shape == (batch_small,)
    assert jnp.allclose(out_small, ref_small, atol=1e-5, rtol=1e-5)

    print("KERNEL_OK")
</pallas_src>

<mosaic_0001>
module attributes {stable_mosaic.version = 11 : i64} {
  func.func @tr_kernel(%arg0: i32, %arg1: memref<144x128xf32, #tpu.memory_space<vmem>>, %arg2: memref<5xf32, #tpu.memory_space<smem>>, %arg3: memref<144x128xf32, #tpu.memory_space<vmem>>) attributes {dimension_semantics = [#tpu.dimension_semantics<parallel>], iteration_bounds = array<i64: 4>, scalar_prefetch = 0 : i64, scratch_operands = 0 : i64, tpu.core_type = #tpu.core_type<tc>, window_params = [{transform_indices = @transform_0, window_bounds = array<i64: 144, 128>}, {transform_indices = @transform_1, window_bounds = array<i64: 5>}, {transform_indices = @transform_2, window_bounds = array<i64: 144, 128>}]} {
    %c0 = arith.constant 0 : index
    %0 = memref.load %arg2[%c0] : memref<5xf32, #tpu.memory_space<smem>>
    %c1 = arith.constant 1 : index
    %1 = memref.load %arg2[%c1] : memref<5xf32, #tpu.memory_space<smem>>
    %c2 = arith.constant 2 : index
    %2 = memref.load %arg2[%c2] : memref<5xf32, #tpu.memory_space<smem>>
    %c3 = arith.constant 3 : index
    %3 = memref.load %arg2[%c3] : memref<5xf32, #tpu.memory_space<smem>>
    %c4 = arith.constant 4 : index
    %4 = memref.load %arg2[%c4] : memref<5xf32, #tpu.memory_space<smem>>
    %c0_0 = arith.constant 0 : index
    %c0_1 = arith.constant 0 : index
    %5 = vector.load %arg1[%c0_0, %c0_1] : memref<144x128xf32, #tpu.memory_space<vmem>>, vector<144x128xf32>
    %6 = vector.broadcast %2 : f32 to vector<144x128xf32>
    %7 = arith.mulf %5, %6 : vector<144x128xf32>
    %8 = vector.broadcast %1 : f32 to vector<144x128xf32>
    %9 = arith.addf %7, %8 : vector<144x128xf32>
    %10 = arith.mulf %9, %5 : vector<144x128xf32>
    %11 = vector.broadcast %0 : f32 to vector<144x128xf32>
    %12 = arith.addf %10, %11 : vector<144x128xf32>
    %cst = arith.constant 3.300000e-01 : f32
    %13 = vector.broadcast %cst : f32 to vector<144x128xf32>
    %14 = arith.subf %5, %13 : vector<144x128xf32>
    %cst_2 = arith.constant 0.000000e+00 : f32
    %15 = vector.broadcast %cst_2 : f32 to vector<144x128xf32>
    %16 = arith.maximumf %14, %15 : vector<144x128xf32>
    %17 = arith.mulf %16, %16 : vector<144x128xf32>
    %18 = vector.broadcast %3 : f32 to vector<144x128xf32>
    %19 = arith.mulf %18, %17 : vector<144x128xf32>
    %20 = arith.addf %12, %19 : vector<144x128xf32>
    %cst_3 = arith.constant 6.600000e-01 : f32
    %21 = vector.broadcast %cst_3 : f32 to vector<144x128xf32>
    %22 = arith.subf %5, %21 : vector<144x128xf32>
    %cst_4 = arith.constant 0.000000e+00 : f32
    %23 = vector.broadcast %cst_4 : f32 to vector<144x128xf32>
    %24 = arith.maximumf %22, %23 : vector<144x128xf32>
    %25 = arith.mulf %24, %24 : vector<144x128xf32>
    %26 = vector.broadcast %4 : f32 to vector<144x128xf32>
    %27 = arith.mulf %26, %25 : vector<144x128xf32>
    %28 = arith.addf %20, %27 : vector<144x128xf32>
    %c0_5 = arith.constant 0 : index
    %c0_6 = arith.constant 0 : index
    %29 = vector.load %arg3[%c0_5, %c0_6] : memref<144x128xf32, #tpu.memory_space<vmem>>, vector<144x128xf32>
    tpu.vector_store %arg3[%c0_5, %c0_6], %28 {strides = array<i32>} : memref<144x128xf32, #tpu.memory_space<vmem>>, vector<144x128xf32>,
    return
  }
  func.func @transform_0(%arg0: i32) -> (i32, i32) {
    %c0_i32 = arith.constant 0 : i32
    %c0_i32_0 = arith.constant 0 : i32
    return %arg0, %c0_i32 : i32, i32
  }
  func.func @transform_1(%arg0: i32) -> i32 {
    %c0_i32 = arith.constant 0 : i32
    %c0_i32_0 = arith.constant 0 : i32
    return %c0_i32 : i32
  }
  func.func @transform_2(%arg0: i32) -> (i32, i32) {
    %c0_i32 = arith.constant 0 : i32
    %c0_i32_0 = arith.constant 0 : i32
    return %arg0, %c0_i32 : i32, i32
  }
}

</mosaic_0001>

<bundles_post_ra>
// kernel: tr_forward.2
= control target key start
LH: loop header
LB: loop body
LE: loop exit
PB: predicated region body
PF: predicated region fallthrough
CT: control target
= control target key end

     0   :  { %s1534_s0 = inlined_call_operand.vmem [shape: f32[5], index: 0, kind: input, shape index: {}]   ;;  %s1535_s1 = inlined_call_operand.vmem [shape: f32[70000], index: 1, kind: input, shape index: {}]   ;;  %s1536_s2 = inlined_call_operand.<no memory space> [shape: f32[], index: 2, kind: input, shape index: {}]   ;;  %s1537_s3 = inlined_call_operand.vmem [shape: f32[576,128], index: 3, kind: output, shape index: {}]  }
   0x1   :  { %v1024_v0 = vstv %s1536_s2 }
   0x2   :  { %1547 = vst [vmem:[#allocation11_spill] sm:$0xff] %v1024_v0 }
   0x3   :  { %9 = vsyncpa [#allocation8], 0  ;;  %s1026_s14 = smov 0  }
   0x4 LB: > { %s816_s15 = sadd.s32 4294967295, %s998_s14   ;;  %p818_p0 = scmp.ge.s32.totalorder %s998_s14, 1  ;;  %s998_s14 = sphi %s1026_s14, %s15_s14  }
   0x5   : > { %p93_p1 = scmp.lt.s32.totalorder %s998_s14, 5  ;;  %s106_s18 = sshll.u32 %s1534_s0, 4  ;;  %s107_s18 = int_to_ptr.vmem [resolvable:$true] %s106_s18 }
   0x6   : > { %p962_p3 = scmp.eq.s32.totalorder %s816_s15, 0  ;;  %s973_s19 = scalar_lea.vmem %s107_s18, 16 }
   0x7   : > { %p1037_p2 = pnand %p818_p0, %p93_p1  ;;  %p974_p6 = scmp.ne.s32.totalorder %s107_s18, %s973_s19 }
   0x8   : > { %p981_p10 = scmp.lt.s32.totalorder %s107_s18, %s107_s18  ;;  %p982_p11 = scmp.lt.s32.totalorder %s973_s19, %s973_s19 }
   0x9   : > { %v1548_v0 = vld [vmem:[#allocation11_spill] sm:$0xff]  ;;  %p958_p4 = pneg %p1037_p2 }
   0xa   : > { %p983_p12 = por %p982_p11, %p981_p10 }
   0xb   : > { %p959_p5 = pnand %p962_p3, %p958_p4 }
   0xd   : > { %p975_p7 = pneg %p959_p5 }
   0xf   : > { %p976_p8 = pnand %p975_p7, %p974_p6 }
  0x11   : > { %p977_p9 = pneg %p976_p8 }
  0x13   : > { %p984_p13 = pnand %p983_p12, %p977_p9 }
  0x15   : > { %987 = shalt.err (!%p984_p13)
}
  0x16   : > { %s1000_s20 = smov [#allocation7]   ;;  %136 = sbr.rel (%p1037_p2) target bundleno = 129 (0x81), region = 28 }
  0x17   : > { %961 = dma.vmem_to_smem (!%p959_p5), %s107_s18, 16, %s1000_s20, [#allocation8]  }
  0x1b   : > { %993 = dma.done.wait (%p962_p3), [#allocation8], 16  }
  0x1c   : > { %995 = vsyncadd (%p962_p3), [#allocation8], 4294967280 }
  0x1d   : > { %142 = sfence }
  0x1e   : > { %s1048_s21 = smul.u32 18, %s816_s15  ;;  %v185_v1 = vlaneseq  ;;  %s1053_s23 = sld [smem:[#allocation7]] }
  0x1f   : > { %s1050_s22 = smul.u32 18432, %s816_s15  ;;  %s1061_s27 = sld [smem:[#allocation7 + $0x1]] }
  0x20   : > { %p168_p0 = scmp.lt.s32.totalorder %s1048_s21, 68  ;;  %s363_s17 = sadd.s32 14, %s1048_s21 }
  0x21   : > { %v186_v2 = vstv %s1050_s22  ;;  %s904_s24 = sadd.s32 1024, %s1050_s22  ;;  %s906_s25 = sadd.s32 2048, %s1050_s22 }
  0x22   : > { %s169_s26 = scalar_select %p168_p0, %s1048_s21, 68  ;;  %v198_v3 = vstv %s904_s24  ;;  %v211_v4 = vstv %s906_s25  ;;  %v187_v5 = vadd.s32 %v186_v2, %v185_v1 }
  0x23   : > { %v199_v6 = vadd.s32 %v198_v3, %v185_v1  ;;  %v212_v7 = vadd.s32 %v211_v4, %v185_v1  ;;  %s908_s29 = sadd.s32 3072, %s1050_s22  ;;  %s910_s6 = sadd.s32 4096, %s1050_s22 }
  0x24   : > { %s823_s28 = sshll.u32 %s169_s26, 3  ;;  %v224_v8 = vstv %s908_s29  ;;  %vm188_vm0 = vcmp.lt.s32.totalorder %v187_v5, 70000  ;;  %v237_v10 = vstv %s910_s6  ;;  %s912_s7 = sadd.s32 5120, %s1050_s22  ;;  %v1089_v24 = vstv %s1053_s23 }
  0x25   : > { %s1068_s5 = scalar_lea.vmem %s1535_s1, %s823_s28  ;;  %v225_v9 = vadd.s32 %v224_v8, %v185_v1  ;;  %vm200_vm1 = vcmp.lt.s32.totalorder %v199_v6, 70000  ;;  %s914_s8 = sadd.s32 6144, %s1050_s22  ;;  %vm213_vm2 = vcmp.lt.s32.totalorder %v212_v7, 70000  ;;  %v238_v13 = vadd.s32 %v237_v10, %v185_v1 }
  0x26   : > { %v183_v11 = vld [vmem:[%s1068_s5] sm:$0xff]  ;;  %v826_v12 = vld [vmem:[%s1068_s5 + $0x8] sm:$0xff]  ;;  %v250_v14 = vstv %s912_s7  ;;  %v263_v15 = vstv %s914_s8  ;;  %s916_s9 = sadd.s32 7168, %s1050_s22  ;;  %s918_s10 = sadd.s32 8192, %s1050_s22 }
  0x27   : > { %v828_v16 = vld [vmem:[%s1068_s5 + $0x10] sm:$0xff]  ;;  %v830_v17 = vld [vmem:[%s1068_s5 + $0x18] sm:$0xff]  ;;  %vm226_vm3 = vcmp.lt.s32.totalorder %v225_v9, 70000  ;;  %v251_v18 = vadd.s32 %v250_v14, %v185_v1  ;;  %v264_v19 = vadd.s32 %v263_v15, %v185_v1  ;;  %v276_v20 = vstv %s916_s9  ;;  %s920_s11 = sadd.s32 9216, %s1050_s22  ;;  %s922_s12 = sadd.s32 10240, %s1050_s22  ;;  %v832_v31 = vld [vmem:[%s1068_s5 + $0x20] sm:$0xff] }
  0x28   : > { %v277_v21 = vadd.s32 %v276_v20, %v185_v1  ;;  %v289_v22 = vstv %s918_s10  ;;  %v302_v23 = vstv %s920_s11  ;;  %s924_s13 = sadd.s32 11264, %s1050_s22  ;;  %s926_s15 = sadd.s32 12288, %s1050_s22  ;;  %v1093_v25 = vsel %vm188_vm0, %v183_v11, %v1548_v0  ;;  %v834_v32 = vld [vmem:[%s1068_s5 + $0x28] sm:$0xff]  ;;  %v836_v34 = vld [vmem:[%s1068_s5 + $0x30] sm:$0xff] }
  0x29   : > { %v1097_v26 = vsel %vm200_vm1, %v826_v12, %v1548_v0  ;;  %v290_v27 = vadd.s32 %v289_v22, %v185_v1  ;;  %s928_s16 = sadd.s32 13312, %s1050_s22  ;;  %v1103_v28 = vstv %s1061_s27  ;;  %v1107_v29 = vsel %vm213_vm2, %v828_v16, %v1548_v0  ;;  %s1116_s18 = ssub.s32 68, %s363_s17  ;;  %v838_v35 = vld [vmem:[%s1068_s5 + $0x38] sm:$0xff]  ;;  %v840_v38 = vld [vmem:[%s1068_s5 + $0x40] sm:$0xff]  ;;  %v842_v40 = vld [vmem:[%s1068_s5 + $0x48] sm:$0xff] }
  0x2a   : > { %v1111_v30 = vsel %vm226_vm3, %v830_v17, %v1548_v0  ;;  %vm239_vm4 = vcmp.lt.s32.totalorder %v238_v13, 70000  ;;  %v303_v33 = vadd.s32 %v302_v23, %v185_v1  ;;  %s930_s2 = sadd.s32 14336, %s1050_s22  ;;  %vm252_vm5 = vcmp.lt.s32.totalorder %v251_v18, 70000  ;;  %p365_p1 = scmp.lt.s32.totalorder %s1116_s18, 0  ;;  %v844_v47 = vld [vmem:[%s1068_s5 + $0x50] sm:$0xff]  ;;  %v846_v3 = vld [vmem:[%s1068_s5 + $0x58] sm:$0xff] }
  0x2b   : > { %vm265_vm6 = vcmp.lt.s32.totalorder %v264_v19, 70000  ;;  %v315_v36 = vstv %s922_s12  ;;  %v328_v37 = vstv %s924_s13  ;;  %s385_s19 = sadd.s32 15, %s1048_s21  ;;  %vm278_vm7 = vcmp.lt.s32.totalorder %v277_v21, 70000  ;;  %s932_s23 = sadd.s32 15360, %s1050_s22  ;;  %v848_v7 = vld [vmem:[%s1068_s5 + $0x60] sm:$0xff]  ;;  %v850_v8 = vld [vmem:[%s1068_s5 + $0x68] sm:$0xff] }
  0x2c   : > { %vm291_vm8 = vcmp.lt.s32.totalorder %v290_v27, 70000  ;;  %vm304_vm9 = vcmp.lt.s32.totalorder %v303_v33, 70000  ;;  %v316_v39 = vadd.s32 %v315_v36, %v185_v1  ;;  %s1125_s20 = ssub.s32 68, %s385_s19  ;;  %v1130_v41 = vadd.s32 %v328_v37, %v185_v1  ;;  %s407_s25 = sadd.s32 16, %s1048_s21 }
  0x2d   : > { %v341_v42 = vstv %s926_s15  ;;  %v354_v43 = vstv %s928_s16  ;;  %s366_s24 = scalar_select %p365_p1, 0, 255  ;;  %v370_v44 = vstv %s1116_s18  ;;  %v1137_v45 = vsel %vm239_vm4, %v832_v31, %v1548_v0 }
  0x2e   : > { %v1141_v46 = vsel %vm252_vm5, %v834_v32, %v1548_v0  ;;  %vm317_vm10 = vcmp.lt.s32.totalorder %v316_v39, 70000  ;;  %v342_v48 = vadd.s32 %v341_v42, %v185_v1  ;;  %p387_p2 = scmp.lt.s32.totalorder %s1125_s20, 0  ;;  %v1149_v49 = vsel %vm265_vm6, %v836_v34, %v1548_v0  ;;  %s408_s26 = ssub.s32 68, %s407_s25 }
  0x2f   : > { %v1153_v50 = vsel %vm278_vm7, %v838_v35, %v1548_v0  ;;  %v355_v51 = vadd.s32 %v354_v43, %v185_v1  ;;  %v376_v52 = vstv %s930_s2  ;;  %s934_s27 = sadd.s32 16384, %s1050_s22  ;;  %v1161_v53 = vsel %vm291_vm8, %v840_v38, %v1548_v0  ;;  %v852_v55 = vld [vmem:[%s1068_s5 + $0x70] sm:%s366_s24]  ;;  %p409_p3 = scmp.lt.s32.totalorder %s408_s26, 0 }
  0x30   : > { %v1165_v54 = vsel %vm304_vm9, %v842_v40, %v1548_v0  ;;  %vm1168_vm11 = vcmp.lt.s32.totalorder %v370_v44, 0  ;;  %v377_v57 = vadd.s32 %v376_v52, %v185_v1  ;;  %s388_s28 = scalar_select %p387_p2, 0, 255  ;;  %v1175_v58 = vsel %vm317_vm10, %v844_v47, %v1548_v0 }
  0x31   : > { %1552 = vst [vmem:[#allocation12_spill] sm:$0xff] %v1175_v58  ;;  %vm330_vm12 = vcmp.lt.s32.totalorder %v1130_v41, 70000  ;;  %v392_v59 = vstv %s1125_s20  ;;  %v398_v60 = vstv %s932_s23  ;;  %s429_s29 = sadd.s32 17, %s1048_s21  ;;  %vm343_vm13 = vcmp.lt.s32.totalorder %v342_v48, 70000  ;;  %s936_s4 = sadd.s32 17408, %s1050_s22 }
  0x32   : > { %v854_v61 = vld [vmem:[%s1068_s5 + $0x78] sm:%s388_s28]  ;;  %vm1181_vm14 = vcmp.lt.s32.totalorder %v392_v59, 0  ;;  %v399_v63 = vadd.s32 %v398_v60, %v185_v1  ;;  %v414_v2 = vstv %s408_s26  ;;  %s430_s30 = ssub.s32 68, %s429_s29  ;;  %vm356_vm15 = vcmp.lt.s32.totalorder %v355_v51, 70000  ;;  %s861_s22 = sld [smem:[#allocation7 + $0x2]] }
  0x33   : > { %v372_v4 = vsel %vm1168_vm11, %v1548_v0, %v852_v55  ;;  %s410_s6 = scalar_select %p409_p3, 0, 255  ;;  %vm1191_vm0 = vcmp.lt.s32.totalorder %v414_v2, 0  ;;  %v420_v6 = vstv %s934_s27  ;;  %vm378_vm1 = vcmp.lt.s32.totalorder %v377_v57, 70000 }
  0x34   : > { %v421_v9 = vadd.s32 %v420_v6, %v185_v1  ;;  %p431_p4 = scmp.lt.s32.totalorder %s430_s30, 0  ;;  %v436_v10 = vstv %s430_s30  ;;  %v442_v11 = vstv %s936_s4  ;;  %v394_v12 = vsel %vm1181_vm14, %v1548_v0, %v854_v61  ;;  %s1408_s8 = sld [smem:[#allocation7 + $0x4]] }
  0x35   : > { %vm400_vm2 = vcmp.lt.s32.totalorder %v399_v63, 70000  ;;  %v856_v13 = vld [vmem:[%s1068_s5 + $0x80] sm:%s410_s6]  ;;  %v443_v14 = vadd.s32 %v442_v11, %v185_v1  ;;  %v1204_v15 = vadd.f32 -0.33, %v1093_v25  ;;  %vm1209_vm4 = vcmp.lt.s32.totalorder %v436_v10, 0  ;;  %p178_p5 = scmp.lt.s32.totalorder %s1048_s21, 71 }
  0x36   : > { %v416_v16 = vsel %vm1191_vm0, %v1548_v0, %v856_v13  ;;  %vm422_vm3 = vcmp.lt.s32.totalorder %v421_v9, 70000  ;;  %s432_s7 = scalar_select %p431_p4, 0, 255  ;;  %v1214_v18 = vadd.f32 -0.33, %v1097_v26  ;;  %v1219_v1 = vsel %vm330_vm12, %v846_v3, %v1548_v0 }
  0x37   : > { %1559 = vst [vmem:[#allocation13_spill] sm:$0xff] %v1219_v1  ;;  %v1223_v19 = vsel %vm343_vm13, %v848_v7, %v1548_v0  ;;  %v1227_v20 = vsel %vm356_vm15, %v850_v8, %v1548_v0  ;;  %v1231_v21 = vsel %vm378_vm1, %v372_v4, %v1548_v0  ;;  %v1234_v22 = vsel %vm400_vm2, %v394_v12, %v1548_v0  ;;  %s1577_s21 = smov (!%p178_p5, %s1048_s21), 71 }
  0x38   : > { %1560 = vst [vmem:[#allocation14_spill] sm:$0xff] %v1223_v19  ;;  %1561 = vst [vmem:[#allocation15_spill] sm:$0xff] %v1227_v20  ;;  %v1237_v23 = vsel %vm422_vm3, %v416_v16, %v1548_v0  ;;  %v858_v27 = vld [vmem:[%s1068_s5 + $0x88] sm:%s432_s7]  ;;  %vm444_vm5 = vcmp.lt.s32.totalorder %v443_v14, 70000  ;;  %v1241_v31 = vadd.f32 -0.33, %v1107_v29  ;;  %v473_v36 = vstv %s861_s22 }
  0x39   : > { %1562 = vst [vmem:[#allocation16_spill] sm:$0xff] %v1231_v21  ;;  %1563 = vst [vmem:[#allocation17_spill] sm:$0xff] %v1234_v22  ;;  %v438_v32 = vsel %vm1209_vm4, %v1548_v0, %v858_v27  ;;  %v1247_v33 = vadd.f32 -0.33, %v1111_v30  ;;  %v1250_v34 = vadd.f32 -0.33, %v1137_v45  ;;  %v474_v44 = vmul.f32 %v473_v36, %v1093_v25 }
  0x3a   : > { %1564 = vst [vmem:[#allocation18_spill] sm:$0xff] %v1237_v23  ;;  %v566_v35 = vmax.f32 %v1204_v15, 0.0  ;;  %v1254_v37 = vadd.f32 -0.33, %v1141_v46  ;;  %v1257_v38 = vadd.f32 -0.33, %v1149_v49  ;;  %v1261_v40 = vsel %vm444_vm5, %v438_v32, %v1548_v0 }
  0x3b   : > { %v567_v39 = vmax.f32 %v1214_v18, 0.0  ;;  %1565 = vst [vmem:[#allocation19_spill] sm:$0xff] %v1261_v40  ;;  %v1264_v41 = vadd.f32 -0.33, %v1153_v50  ;;  %v1267_v42 = vadd.f32 -0.33, %v1161_v53  ;;  %v475_v47 = vmul.f32 %v473_v36, %v1097_v26 }
  0x3c   : > { %v1270_v43 = vadd.f32 -0.33, %v1165_v54  ;;  %v476_v48 = vmul.f32 %v473_v36, %v1107_v29  ;;  %v477_v51 = vmul.f32 %v473_v36, %v1111_v30  ;;  %v478_v52 = vmul.f32 %v473_v36, %v1137_v45  ;;  %s1368_s5 = sld [smem:[#allocation7 + $0x3]]  ;;  %s824_s9 = sshll.u32 %s1577_s21, 3 }
  0x3d   : > { %v479_v55 = vmul.f32 %v473_v36, %v1141_v46  ;;  %v480_v56 = vmul.f32 %v473_v36, %v1149_v49  ;;  %v481_v57 = vmul.f32 %v473_v36, %v1153_v50  ;;  %v482_v59 = vmul.f32 %v473_v36, %v1161_v53  ;;  %s1493_s12 = scalar_lea.vmem %s1537_s3, %s824_s9 }
  0x3e   : > { %v483_v60 = vmul.f32 %v473_v36, %v1165_v54  ;;  %v484_v61 = vmul.f32 %v473_v36, %v1175_v58  ;;  %v485_v62 = vmul.f32 %v473_v36, %v1219_v1  ;;  %v486_v63 = vmul.f32 %v473_v36, %v1223_v19 }
  0x3f   : > { %v487_v2 = vmul.f32 %v473_v36, %v1227_v20  ;;  %v488_v3 = vmul.f32 %v473_v36, %v1231_v21  ;;  %v489_v4 = vmul.f32 %v473_v36, %v1234_v22  ;;  %v490_v5 = vmul.f32 %v473_v36, %v1237_v23 }
  0x40   : > { %v491_v6 = vmul.f32 %v473_v36, %v1261_v40  ;;  %v493_v7 = vadd.f32 %v1103_v28, %v474_v44  ;;  %v494_v8 = vadd.f32 %v1103_v28, %v475_v47  ;;  %v495_v9 = vadd.f32 %v1103_v28, %v476_v48 }
  0x41   : > { %v496_v10 = vadd.f32 %v1103_v28, %v477_v51  ;;  %v497_v11 = vadd.f32 %v1103_v28, %v478_v52  ;;  %v498_v12 = vadd.f32 %v1103_v28, %v479_v55  ;;  %v499_v13 = vadd.f32 %v1103_v28, %v480_v56 }
  0x42   : > { %v500_v14 = vadd.f32 %v1103_v28, %v481_v57  ;;  %v501_v16 = vadd.f32 %v1103_v28, %v482_v59  ;;  %v502_v17 = vadd.f32 %v1103_v28, %v483_v60  ;;  %v503_v27 = vadd.f32 %v1103_v28, %v484_v61 }
  0x43   : > { %v504_v32 = vadd.f32 %v1103_v28, %v485_v62  ;;  %v505_v36 = vadd.f32 %v1103_v28, %v486_v63  ;;  %v506_v44 = vadd.f32 %v1103_v28, %v487_v2  ;;  %v507_v47 = vadd.f32 %v1103_v28, %v488_v3 }
  0x44   : > { %v508_v48 = vadd.f32 %v1103_v28, %v489_v4  ;;  %v509_v51 = vadd.f32 %v1103_v28, %v490_v5  ;;  %v510_v52 = vadd.f32 %v1103_v28, %v491_v6  ;;  %v511_v55 = vmul.f32 %v493_v7, %v1093_v25 }
  0x45   : > { %v512_v56 = vmul.f32 %v494_v8, %v1097_v26  ;;  %v513_v57 = vmul.f32 %v495_v9, %v1107_v29  ;;  %v514_v59 = vmul.f32 %v496_v10, %v1111_v30  ;;  %v515_v60 = vmul.f32 %v497_v11, %v1137_v45 }
  0x46   : > { %v516_v61 = vmul.f32 %v498_v12, %v1141_v46  ;;  %v517_v62 = vmul.f32 %v499_v13, %v1149_v49  ;;  %v518_v63 = vmul.f32 %v500_v14, %v1153_v50  ;;  %v519_v2 = vmul.f32 %v501_v16, %v1161_v53 }
  0x47   : > { %v520_v28 = vmul.f32 %v502_v17, %v1165_v54  ;;  %v521_v3 = vmul.f32 %v503_v27, %v1175_v58  ;;  %v522_v4 = vmul.f32 %v504_v32, %v1219_v1  ;;  %v523_v5 = vmul.f32 %v505_v36, %v1223_v19 }
  0x48   : > { %v524_v6 = vmul.f32 %v506_v44, %v1227_v20  ;;  %v525_v7 = vmul.f32 %v507_v47, %v1231_v21  ;;  %v526_v8 = vmul.f32 %v508_v48, %v1234_v22  ;;  %v527_v9 = vmul.f32 %v509_v51, %v1237_v23 }
  0x49   : > { %v528_v10 = vmul.f32 %v510_v52, %v1261_v40  ;;  %v1327_v11 = vadd.f32 %v1089_v24, %v511_v55  ;;  %v1330_v12 = vadd.f32 %v1089_v24, %v512_v56  ;;  %v1333_v13 = vadd.f32 %v1089_v24, %v513_v57 }
  0x4a   : > { %v1336_v14 = vadd.f32 %v1089_v24, %v514_v59  ;;  %v1339_v16 = vadd.f32 %v1089_v24, %v515_v60  ;;  %v1342_v17 = vadd.f32 %v1089_v24, %v516_v61  ;;  %v1345_v27 = vadd.f32 %v1089_v24, %v517_v62 }
  0x4b   : > { %v1348_v32 = vadd.f32 %v1089_v24, %v518_v63  ;;  %v1351_v36 = vadd.f32 %v1089_v24, %v519_v2  ;;  %v1354_v44 = vadd.f32 %v1089_v24, %v520_v28  ;;  %v1357_v47 = vadd.f32 %v1089_v24, %v521_v3 }
  0x4c   : > { %v1360_v48 = vadd.f32 %v1089_v24, %v522_v4  ;;  %v1363_v51 = vadd.f32 %v1089_v24, %v523_v5  ;;  %v1366_v52 = vadd.f32 %v1089_v24, %v524_v6  ;;  %v1371_v55 = vadd.f32 %v1089_v24, %v525_v7 }
  0x4d   : > { %v1374_v56 = vadd.f32 %v1089_v24, %v526_v8  ;;  %v1377_v57 = vadd.f32 %v1089_v24, %v527_v9  ;;  %v1380_v59 = vadd.f32 %v1089_v24, %v528_v10  ;;  %v874_v60 = vadd.f32 -0.33, %v1175_v58 }
  0x4e   : > { %v875_v61 = vadd.f32 -0.33, %v1219_v1  ;;  %v876_v62 = vadd.f32 -0.33, %v1223_v19  ;;  %v584_v63 = vmul.f32 %v566_v35, %v566_v35  ;;  %v877_v2 = vadd.f32 -0.33, %v1227_v20 }
  0x4f   : > { %1566 = vst [vmem:[#allocation20_spill] sm:$0xff] %v1380_v59  ;;  %v878_v28 = vadd.f32 -0.33, %v1231_v21  ;;  %v879_v3 = vadd.f32 -0.33, %v1234_v22  ;;  %v585_v24 = vmul.f32 %v567_v39, %v567_v39  ;;  %v568_v6 = vmax.f32 %v1241_v31, 0.0 }
  0x50   : > { %v880_v4 = vadd.f32 -0.33, %v1237_v23  ;;  %v881_v5 = vadd.f32 -0.33, %v1261_v40  ;;  %v569_v15 = vmax.f32 %v1247_v33, 0.0  ;;  %v570_v35 = vmax.f32 %v1250_v34, 0.0 }
  0x51   : > { %v571_v7 = vmax.f32 %v1254_v37, 0.0  ;;  %v572_v8 = vmax.f32 %v1257_v38, 0.0  ;;  %v573_v9 = vmax.f32 %v1264_v41, 0.0  ;;  %v574_v18 = vmax.f32 %v1267_v42, 0.0 }
  0x52   : > { %v575_v39 = vmax.f32 %v1270_v43, 0.0  ;;  %v576_v10 = vmax.f32 %v874_v60, 0.0  ;;  %v577_v0 = vmax.f32 %v875_v61, 0.0  ;;  %v578_v23 = vmax.f32 %v876_v62, 0.0 }
  0x53   : > { %v579_v40 = vmax.f32 %v877_v2, 0.0  ;;  %v580_v22 = vmax.f32 %v878_v28, 0.0  ;;  %v581_v31 = vmax.f32 %v879_v3, 0.0  ;;  %v582_v33 = vmax.f32 %v880_v4, 0.0 }
  0x54   : > { %v583_v21 = vmax.f32 %v881_v5, 0.0  ;;  %v586_v34 = vmul.f32 %v568_v6, %v568_v6  ;;  %v587_v20 = vmul.f32 %v569_v15, %v569_v15  ;;  %v588_v37 = vmul.f32 %v570_v35, %v570_v35 }
  0x55   : > { %v589_v19 = vmul.f32 %v571_v7, %v571_v7  ;;  %v590_v38 = vmul.f32 %v572_v8, %v572_v8  ;;  %v591_v1 = vmul.f32 %v573_v9, %v573_v9  ;;  %v592_v41 = vmul.f32 %v574_v18, %v574_v18 }
  0x56   : > { %v593_v58 = vmul.f32 %v575_v39, %v575_v39  ;;  %v594_v42 = vmul.f32 %v576_v10, %v576_v10  ;;  %v595_v59 = vmul.f32 %v577_v0, %v577_v0  ;;  %v596_v43 = vmul.f32 %v578_v23, %v578_v23 }
  0x57   : > { %v597_v60 = vmul.f32 %v579_v40, %v579_v40  ;;  %v598_v61 = vmul.f32 %v580_v22, %v580_v22  ;;  %v602_v62 = vstv %s1368_s5  ;;  %v599_v2 = vmul.f32 %v581_v31, %v581_v31 }
  0x58   : > { %v600_v28 = vmul.f32 %v582_v33, %v582_v33  ;;  %v601_v3 = vmul.f32 %v583_v21, %v583_v21  ;;  %v1406_v4 = vadd.f32 -0.66, %v1093_v25  ;;  %v603_v5 = vmul.f32 %v602_v62, %v584_v63 }
  0x59   : > { %v604_v6 = vmul.f32 %v602_v62, %v585_v24  ;;  %v605_v15 = vmul.f32 %v602_v62, %v586_v34  ;;  %v606_v35 = vmul.f32 %v602_v62, %v587_v20  ;;  %v607_v7 = vmul.f32 %v602_v62, %v588_v37 }
  0x5a   : > { %v608_v8 = vmul.f32 %v602_v62, %v589_v19  ;;  %v609_v9 = vmul.f32 %v602_v62, %v590_v38  ;;  %v610_v18 = vmul.f32 %v602_v62, %v591_v1  ;;  %v611_v39 = vmul.f32 %v602_v62, %v592_v41 }
  0x5b   : > { %v612_v0 = vmul.f32 %v602_v62, %v593_v58  ;;  %v613_v23 = vmul.f32 %v602_v62, %v594_v42  ;;  %v614_v40 = vmul.f32 %v602_v62, %v595_v59  ;;  %v615_v22 = vmul.f32 %v602_v62, %v596_v43 }
  0x5c   : > { %v616_v10 = vmul.f32 %v602_v62, %v597_v60  ;;  %v617_v31 = vmul.f32 %v602_v62, %v598_v61  ;;  %v618_v33 = vmul.f32 %v602_v62, %v599_v2  ;;  %v619_v25 = vmul.f32 %v602_v62, %v600_v28 }
  0x5d   : > { %v620_v21 = vmul.f32 %v602_v62, %v601_v3  ;;  %v1411_v63 = vadd.f32 %v603_v5, %v1327_v11  ;;  %v1414_v20 = vadd.f32 %v604_v6, %v1330_v12  ;;  %v1417_v1 = vadd.f32 %v605_v15, %v1333_v13  ;;  %v1573_v62 = vld [vmem:[#allocation17_spill] sm:$0xff] }
  0x5e   : > { %v1420_v58 = vadd.f32 %v606_v35, %v1336_v14  ;;  %v1423_v19 = vadd.f32 %v607_v7, %v1339_v16  ;;  %v1426_v59 = vadd.f32 %v608_v8, %v1342_v17  ;;  %v1429_v24 = vadd.f32 %v609_v9, %v1345_v27 }
  0x5f   : > { %v1432_v11 = vadd.f32 %v610_v18, %v1348_v32  ;;  %v1435_v12 = vadd.f32 %v611_v39, %v1351_v36  ;;  %v1438_v13 = vadd.f32 %v612_v0, %v1354_v44  ;;  %v1441_v14 = vadd.f32 %v613_v23, %v1357_v47 }
  0x60   : > { %v1444_v16 = vadd.f32 %v614_v40, %v1360_v48  ;;  %v1447_v17 = vadd.f32 %v615_v22, %v1363_v51  ;;  %v1450_v27 = vadd.f32 %v616_v10, %v1366_v52  ;;  %v1453_v32 = vadd.f32 %v617_v31, %v1371_v55 }
  0x61   : > { %v883_v36 = vadd.f32 -0.66, %v1097_v26  ;;  %v884_v44 = vadd.f32 -0.66, %v1107_v29  ;;  %v885_v34 = vadd.f32 -0.66, %v1111_v30  ;;  %v1459_v47 = vadd.f32 %v618_v33, %v1374_v56 }
  0x62   : > { %v886_v48 = vadd.f32 -0.66, %v1137_v45  ;;  %v887_v51 = vadd.f32 -0.66, %v1141_v46  ;;  %v888_v52 = vadd.f32 -0.66, %v1149_v49  ;;  %v1465_v37 = vadd.f32 %v619_v25, %v1377_v57 }
  0x63   : > { %v889_v55 = vadd.f32 -0.66, %v1153_v50  ;;  %v890_v26 = vadd.f32 -0.66, %v1161_v53  ;;  %v891_v29 = vadd.f32 -0.66, %v1165_v54  ;;  %v693_v2 = vstv %s1408_s8 }
  0x64   : > { %v1567_v30 = vld [vmem:[#allocation20_spill] sm:$0xff]  ;;  %v1569_v45 = vld [vmem:[#allocation13_spill] sm:$0xff]  ;;  %v1570_v46 = vld [vmem:[#allocation14_spill] sm:$0xff]  ;;  %v897_v50 = vadd.f32 -0.66, %v1573_v62  ;;  %v657_v5 = vmax.f32 %v1406_v4, 0.0 }
  0x65   : > { %v1471_v38 = vadd.f32 %v620_v21, %v1567_v30  ;;  %v1568_v56 = vld [vmem:[#allocation12_spill] sm:$0xff]  ;;  %v893_v42 = vadd.f32 -0.66, %v1569_v45  ;;  %v894_v43 = vadd.f32 -0.66, %v1570_v46  ;;  %v1571_v49 = vld [vmem:[#allocation15_spill] sm:$0xff] }
  0x66   : > { %v892_v41 = vadd.f32 -0.66, %v1568_v56  ;;  %v895_v60 = vadd.f32 -0.66, %v1571_v49  ;;  %v1572_v57 = vld [vmem:[#allocation16_spill] sm:$0xff]  ;;  %v1574_v53 = vld [vmem:[#allocation18_spill] sm:$0xff]  ;;  %v675_v21 = vmul.f32 %v657_v5, %v657_v5 }
  0x67   : > { %v896_v61 = vadd.f32 -0.66, %v1572_v57  ;;  %v898_v28 = vadd.f32 -0.66, %v1574_v53  ;;  %v1575_v54 = vld [vmem:[#allocation19_spill] sm:$0xff]  ;;  %v658_v6 = vmax.f32 %v883_v36, 0.0 }
  0x68   : > { %v899_v3 = vadd.f32 -0.66, %v1575_v54  ;;  %v659_v15 = vmax.f32 %v884_v44, 0.0  ;;  %v660_v35 = vmax.f32 %v885_v34, 0.0  ;;  %v661_v7 = vmax.f32 %v886_v48, 0.0 }
  0x69   : > { %v662_v8 = vmax.f32 %v887_v51, 0.0  ;;  %v663_v9 = vmax.f32 %v888_v52, 0.0  ;;  %v664_v18 = vmax.f32 %v889_v55, 0.0  ;;  %v665_v39 = vmax.f32 %v890_v26, 0.0 }
  0x6a   : > { %v666_v0 = vmax.f32 %v891_v29, 0.0  ;;  %v667_v23 = vmax.f32 %v892_v41, 0.0  ;;  %v668_v40 = vmax.f32 %v893_v42, 0.0  ;;  %v669_v22 = vmax.f32 %v894_v43, 0.0 }
  0x6b   : > { %v670_v10 = vmax.f32 %v895_v60, 0.0  ;;  %v671_v31 = vmax.f32 %v896_v61, 0.0  ;;  %v672_v33 = vmax.f32 %v897_v50, 0.0  ;;  %v673_v25 = vmax.f32 %v898_v28, 0.0 }
  0x6c   : > { %v674_v4 = vmax.f32 %v899_v3, 0.0  ;;  %v676_v36 = vmul.f32 %v658_v6, %v658_v6  ;;  %v677_v44 = vmul.f32 %v659_v15, %v659_v15  ;;  %v678_v34 = vmul.f32 %v660_v35, %v660_v35 }
  0x6d   : > { %v679_v48 = vmul.f32 %v661_v7, %v661_v7  ;;  %v680_v51 = vmul.f32 %v662_v8, %v662_v8  ;;  %v681_v52 = vmul.f32 %v663_v9, %v663_v9  ;;  %v682_v55 = vmul.f32 %v664_v18, %v664_v18 }
  0x6e   : > { %v683_v26 = vmul.f32 %v665_v39, %v665_v39  ;;  %v684_v29 = vmul.f32 %v666_v0, %v666_v0  ;;  %v685_v30 = vmul.f32 %v667_v23, %v667_v23  ;;  %v686_v56 = vmul.f32 %v668_v40, %v668_v40 }
  0x6f   : > { %v687_v41 = vmul.f32 %v669_v22, %v669_v22  ;;  %v688_v45 = vmul.f32 %v670_v10, %v670_v10  ;;  %v689_v42 = vmul.f32 %v671_v31, %v671_v31  ;;  %v690_v46 = vmul.f32 %v672_v33, %v672_v33 }
  0x70   : > { %v691_v43 = vmul.f32 %v673_v25, %v673_v25  ;;  %v692_v49 = vmul.f32 %v674_v4, %v674_v4  ;;  %v694_v60 = vmul.f32 %v693_v2, %v675_v21  ;;  %v695_v57 = vmul.f32 %v693_v2, %v676_v36 }
  0x71   : > { %v696_v61 = vmul.f32 %v693_v2, %v677_v44  ;;  %v697_v62 = vmul.f32 %v693_v2, %v678_v34  ;;  %v698_v50 = vmul.f32 %v693_v2, %v679_v48  ;;  %v699_v53 = vmul.f32 %v693_v2, %v680_v51 }
  0x72   : > { %v700_v28 = vmul.f32 %v693_v2, %v681_v52  ;;  %v701_v54 = vmul.f32 %v693_v2, %v682_v55  ;;  %v702_v3 = vmul.f32 %v693_v2, %v683_v26  ;;  %v703_v5 = vmul.f32 %v693_v2, %v684_v29 }
  0x73   : > { %v704_v6 = vmul.f32 %v693_v2, %v685_v30  ;;  %v705_v15 = vmul.f32 %v693_v2, %v686_v56  ;;  %v706_v35 = vmul.f32 %v693_v2, %v687_v41  ;;  %v707_v7 = vmul.f32 %v693_v2, %v688_v45 }
  0x74   : > { %v708_v8 = vmul.f32 %v693_v2, %v689_v42  ;;  %v709_v9 = vmul.f32 %v693_v2, %v690_v46  ;;  %v710_v18 = vmul.f32 %v693_v2, %v691_v43  ;;  %v711_v39 = vmul.f32 %v693_v2, %v692_v49 }
  0x75   : > { %v712_v0 = vadd.f32 %v694_v60, %v1411_v63  ;;  %v713_v23 = vadd.f32 %v695_v57, %v1414_v20  ;;  %v714_v40 = vadd.f32 %v696_v61, %v1417_v1  ;;  %v715_v22 = vadd.f32 %v697_v62, %v1420_v58 }
  0x76   : > { %v716_v10 = vadd.f32 %v698_v50, %v1423_v19  ;;  %v717_v31 = vadd.f32 %v699_v53, %v1426_v59  ;;  %v718_v33 = vadd.f32 %v700_v28, %v1429_v24  ;;  %v719_v2 = vadd.f32 %v701_v54, %v1432_v11 }
  0x77   : > { %v720_v63 = vadd.f32 %v702_v3, %v1435_v12  ;;  %v721_v20 = vadd.f32 %v703_v5, %v1438_v13  ;;  %v722_v1 = vadd.f32 %v704_v6, %v1441_v14  ;;  %v723_v58 = vadd.f32 %v705_v15, %v1444_v16  ;;  %730 = vst [vmem:[%s1493_s12] sm:$0xff] %v712_v0 }
  0x78   : > { %731 = vst [vmem:[%s1493_s12 + $0x8] sm:$0xff] %v713_v23  ;;  %732 = vst [vmem:[%s1493_s12 + $0x10] sm:$0xff] %v714_v40  ;;  %v724_v19 = vadd.f32 %v706_v35, %v1447_v17  ;;  %v725_v59 = vadd.f32 %v707_v7, %v1450_v27  ;;  %v726_v24 = vadd.f32 %v708_v8, %v1453_v32 }
  0x79   : > { %733 = vst [vmem:[%s1493_s12 + $0x18] sm:$0xff] %v715_v22  ;;  %v727_v11 = vadd.f32 %v709_v9, %v1459_v47  ;;  %734 = vst [vmem:[%s1493_s12 + $0x20] sm:$0xff] %v716_v10  ;;  %v728_v12 = vadd.f32 %v710_v18, %v1465_v37  ;;  %v729_v13 = vadd.f32 %v711_v39, %v1471_v38 }
  0x7a   : > { %735 = vst [vmem:[%s1493_s12 + $0x28] sm:$0xff] %v717_v31  ;;  %736 = vst [vmem:[%s1493_s12 + $0x30] sm:$0xff] %v718_v33 }
  0x7b   : > { %737 = vst [vmem:[%s1493_s12 + $0x38] sm:$0xff] %v719_v2  ;;  %738 = vst [vmem:[%s1493_s12 + $0x40] sm:$0xff] %v720_v63 }
  0x7c   : > { %739 = vst [vmem:[%s1493_s12 + $0x48] sm:$0xff] %v721_v20  ;;  %740 = vst [vmem:[%s1493_s12 + $0x50] sm:$0xff] %v722_v1 }
  0x7d   : > { %741 = vst [vmem:[%s1493_s12 + $0x58] sm:$0xff] %v723_v58  ;;  %742 = vst [vmem:[%s1493_s12 + $0x60] sm:$0xff] %v724_v19 }
  0x7e   : > { %743 = vst [vmem:[%s1493_s12 + $0x68] sm:$0xff] %v725_v59  ;;  %744 = vst [vmem:[%s1493_s12 + $0x70] sm:$0xff] %v726_v24 }
  0x7f   : > { %745 = vst [vmem:[%s1493_s12 + $0x78] sm:$0xff] %v727_v11  ;;  %746 = vst [vmem:[%s1493_s12 + $0x80] sm:$0xff] %v728_v12 }
  0x80   : > { %747 = vst [vmem:[%s1493_s12 + $0x88] sm:$0xff] %v729_v13 }
  0x81 PF: > { %s15_s14 = sadd.s32 1, %s998_s14  }
  0x82   : > { %p12_p6 = scmp.ge.s32.totalorder %s15_s14, 6  }
  0x84   :  { %14 = sbr.rel (!%p12_p6) target bundleno = 4 (0x4), region = 97 }
  0x89   :  { %770 = vsyncpa [#allocation8], 1 }
  0x8a   :  { %772 = vsyncpa [#allocation8 + $0x1], 1 }

</bundles_post_ra>
